<compile_context>
chip_gen: v5e
topology: v5e:2x2
jax: 0.10.0
libtpu: 0.0.40
codegen_flags: <defaults>
</compile_context>

<pallas_src>
import functools

import jax
import jax.numpy as jnp
import numpy as np
from jax import lax
from jax.experimental import pallas as pl
from jax.experimental.pallas import tpu as pltpu


# --------------------------------------------------------------------------
# Fast path: stride == 1, lane-fused layout.
# --------------------------------------------------------------------------
def _mddsc_fused_kernel(x_ref, w1_ref, w2_ref, bn_ref, wbd_ref, bp_ref, o_ref,
                        *, k, dil1, dil2, Ho, Wo, Wt, Cin, Cout, Bblk):
    """One grid step = Bblk images.  x_ref: (Bblk, Hp, Wp*Cin) fused NHWC."""
    WoC = Wo * Cin
    WtC = Wt * Cin
    WtO = Wt * Cout
    n_wt = Wo // Wt

    # Hoisted small operands (traced once, reused across images / tiles).
    wbd = wbd_ref[...].astype(jnp.float32)          # (Wt*Cin, Wt*Cout)
    bp = bp_ref[...].astype(jnp.float32)            # (1, Wt*Cout)
    sc1, sh1 = bn_ref[0:1, :], bn_ref[1:2, :]       # (1, Wo*Cin) folded BN
    sc2, sh2 = bn_ref[2:3, :], bn_ref[3:4, :]

    for b in range(Bblk):
        # ---- depthwise branches, accumulated in fused (Ho, Wo*Cin) layout ----
        if dil1 == dil2:
            acc1 = acc2 = None
            for i in range(k):
                for j in range(k):
                    t = i * k + j
                    r0, c0 = i * dil1, j * dil1 * Cin
                    # static offsets -> cheap ref view, loads exactly the window
                    patch = x_ref[b, r0:r0 + Ho, c0:c0 + WoC].astype(jnp.float32)
                    tw1 = w1_ref[t:t + 1, :].astype(jnp.float32)
                    tw2 = w2_ref[t:t + 1, :].astype(jnp.float32)
                    if acc1 is None:
                        acc1, acc2 = patch * tw1, patch * tw2
                    else:
                        acc1 = acc1 + patch * tw1
                        acc2 = acc2 + patch * tw2
        else:
            def dw(w_ref, dil):
                acc = None
                for i in range(k):
                    for j in range(k):
                        t = i * k + j
                        r0, c0 = i * dil, j * dil * Cin
                        patch = x_ref[b, r0:r0 + Ho,
                                      c0:c0 + WoC].astype(jnp.float32)
                        tw = w_ref[t:t + 1, :].astype(jnp.float32)
                        acc = patch * tw if acc is None else acc + patch * tw
                return acc
            acc1 = dw(w1_ref, dil1)
            acc2 = dw(w2_ref, dil2)

        # ---- folded BN + ReLU, branch sum (still lane-dense, VPU) ----
        y1 = jnp.maximum(acc1 * sc1 + sh1, 0.0)
        y2 = jnp.maximum(acc2 * sc2 + sh2, 0.0)
        s = y1 + y2                                   # (Ho, Wo*Cin)

        # ---- pointwise 1x1 conv as block-diagonal MXU matmul ----
        for wti in range(n_wt):
            lhs = s if n_wt == 1 else s[:, wti * WtC:(wti + 1) * WtC]
            tile = jnp.dot(lhs, wbd, preferred_element_type=jnp.float32)
            tile = (tile + bp).astype(o_ref.dtype)    # (Ho, Wt*Cout)
            if n_wt == 1:
                o_ref[b] = tile                       # lane-dense full-width store
            else:
                o_ref[b, :, wti * WtO:(wti + 1) * WtO] = tile


# --------------------------------------------------------------------------
# General fallback: stride > 1 (unfused NHWC layout, slower but correct).
# --------------------------------------------------------------------------
def _mddsc_general_kernel(x_ref, w1_ref, w2_ref, bn_ref, wp_ref, bp_ref, o_ref,
                          *, k, stride, dil1, dil2, Ho, Wo, Cin, Cout):
    # TODO(synk): lane-dense relayout for the strided case not implemented;
    # this path keeps the simpler NHWC formulation.
    xv = x_ref[0].astype(jnp.float32)                 # (Hp, Wp, Cin)

    def dwconv(w_ref, dil):
        acc = None
        for i in range(k):
            for j in range(k):
                patch = lax.slice(
                    xv, (i * dil, j * dil, 0),
                    (i * dil + (Ho - 1) * stride + 1,
                     j * dil + (Wo - 1) * stride + 1, Cin),
                    (stride, stride, 1))
                tap = w_ref[i * k + j].astype(jnp.float32).reshape(1, 1, Cin)
                term = patch * tap
                acc = term if acc is None else acc + term
        return acc

    y1 = jnp.maximum(dwconv(w1_ref, dil1) * bn_ref[0].reshape(1, 1, Cin)
                     + bn_ref[1].reshape(1, 1, Cin), 0.0)
    y2 = jnp.maximum(dwconv(w2_ref, dil2) * bn_ref[2].reshape(1, 1, Cin)
                     + bn_ref[3].reshape(1, 1, Cin), 0.0)
    s = (y1 + y2).reshape(Ho * Wo, Cin)
    out = jnp.dot(s, wp_ref[...].astype(jnp.float32),
                  preferred_element_type=jnp.float32) + bp_ref[...]
    o_ref[0] = out.reshape(Ho, Wo, Cout).astype(o_ref.dtype)


# --------------------------------------------------------------------------
# Wrapper (NCHW in, NCHW out — matches the PyTorch module).
# --------------------------------------------------------------------------
def _pick_w_tile(Wo, Cin, Cout):
    """Largest divisor of Wo keeping the block-diagonal weight small."""
    best = 1
    for wt in range(1, Wo + 1):
        if Wo % wt:
            continue
        if wt <= 64 and wt * wt * Cin * Cout * 4 <= (2 << 20):
            best = wt
    return best


def multi_dilation_dwsep_conv2d(x_nchw, params, *, kernel_size, stride=1,
                                padding=0, dilation=1, eps=1e-3,
                                batch_block=1):
    N, Cin, H, W = x_nchw.shape
    k, s, p, d = kernel_size, stride, padding, dilation
    Cout = params["wp"].shape[0]

    def osz(L, dil):
        return (L + 2 * p - dil * (k - 1) - 1) // s + 1
    Ho, Wo = osz(H, 1), osz(W, 1)
    assert (Ho, Wo) == (osz(H, d), osz(W, d)), \
        "branch output shapes must match for x1 + x2"

    # ---- fold conv bias + eval-mode BN into per-channel scale/shift ----
    def fold_bn(bias, gamma, beta, mean, var):
        a = gamma / jnp.sqrt(var + eps)
        return a, beta + a * (bias - mean)

    w1 = jnp.transpose(params["w1"][:, 0], (1, 2, 0)).reshape(k * k, Cin)
    w2 = jnp.transpose(params["w2"][:, 0], (1, 2, 0)).reshape(k * k, Cin)
    s1, t1 = fold_bn(params["b1"], params["gamma1"], params["beta1"],
                     params["mean1"], params["var1"])
    s2, t2 = fold_bn(params["b2"], params["gamma2"], params["beta2"],
                     params["mean2"], params["var2"])
    wp = jnp.transpose(params["wp"][:, :, 0, 0], (1, 0))          # (Cin, Cout)
    bp = params["bp"]

    x_nhwc = jnp.transpose(x_nchw, (0, 2, 3, 1))
    xpad = jnp.pad(x_nhwc, ((0, 0), (p, p), (p, p), (0, 0)))
    Hp, Wp = H + 2 * p, W + 2 * p

    if s == 1:
        # --------------------- fast lane-fused path ---------------------
        Wt = _pick_w_tile(Wo, Cin, Cout)
        # per-tap weights / BN tiled so index (w*Cin + c) -> channel c value
        w1_t = jnp.tile(w1, (1, Wo))                               # (k*k, Wo*Cin)
        w2_t = jnp.tile(w2, (1, Wo))
        bn_t = jnp.tile(jnp.stack([s1, t1, s2, t2], 0), (1, Wo))   # (4, Wo*Cin)
        # block-diagonal pointwise weight: wbd[w'*Cin+c, w*Cout+co] = wp[c,co]*[w'==w]
        wbd = jnp.einsum("ab,cd->acbd", jnp.eye(Wt, dtype=wp.dtype), wp
                         ).reshape(Wt * Cin, Wt * Cout)
        bp_t = jnp.tile(bp, (Wt,)).reshape(1, Wt * Cout)

        Nb = -(-N // batch_block) * batch_block
        if Nb != N:
            xpad_b = jnp.pad(xpad, ((0, Nb - N), (0, 0), (0, 0), (0, 0)))
        else:
            xpad_b = xpad
        xf = xpad_b.reshape(Nb, Hp, Wp * Cin)                      # free reshape

        kernel = functools.partial(
            _mddsc_fused_kernel, k=k, dil1=1, dil2=d, Ho=Ho, Wo=Wo, Wt=Wt,
            Cin=Cin, Cout=Cout, Bblk=batch_block)

        flops = Nb * (4 * k * k * Ho * Wo * Cin + 2 * Ho * Wo * Wt * Cin * Cout)
        bytes_accessed = 4 * (xf.size + Nb * Ho * Wo * Cout + w1_t.size
                              + w2_t.size + bn_t.size + wbd.size + bp_t.size)

        out_f = pl.pallas_call(
            kernel,
            out_shape=jax.ShapeDtypeStruct((Nb, Ho, Wo * Cout), x_nchw.dtype),
            grid_spec=pltpu.PrefetchScalarGridSpec(
                num_scalar_prefetch=0,
                grid=(Nb // batch_block,),
                in_specs=[
                    pl.BlockSpec((batch_block, Hp, Wp * Cin), lambda n: (n, 0, 0)),
                    pl.BlockSpec((k * k, Wo * Cin), lambda n: (0, 0)),
                    pl.BlockSpec((k * k, Wo * Cin), lambda n: (0, 0)),
                    pl.BlockSpec((4, Wo * Cin), lambda n: (0, 0)),
                    pl.BlockSpec((Wt * Cin, Wt * Cout), lambda n: (0, 0)),
                    pl.BlockSpec((1, Wt * Cout), lambda n: (0, 0)),
                ],
                out_specs=pl.BlockSpec((batch_block, Ho, Wo * Cout),
                                       lambda n: (n, 0, 0)),
            ),
            compiler_params=pltpu.CompilerParams(
                dimension_semantics=("parallel",)),
            cost_estimate=pl.CostEstimate(flops=flops, transcendentals=0,
                                          bytes_accessed=bytes_accessed),
        )(xf, w1_t, w2_t, bn_t, wbd, bp_t)

        out = out_f[:N].reshape(N, Ho, Wo, Cout)
    else:
        # ---------------------- general stride > 1 ----------------------
        bn_g = jnp.stack([s1, t1, s2, t2], 0)                      # (4, Cin)
        bp_g = bp.reshape(1, Cout)
        kernel = functools.partial(
            _mddsc_general_kernel, k=k, stride=s, dil1=1, dil2=d,
            Ho=Ho, Wo=Wo, Cin=Cin, Cout=Cout)
        out = pl.pallas_call(
            kernel,
            out_shape=jax.ShapeDtypeStruct((N, Ho, Wo, Cout), x_nchw.dtype),
            grid_spec=pltpu.PrefetchScalarGridSpec(
                num_scalar_prefetch=0,
                grid=(N,),
                in_specs=[
                    pl.BlockSpec((1, Hp, Wp, Cin), lambda n: (n, 0, 0, 0)),
                    pl.BlockSpec((k * k, Cin), lambda n: (0, 0)),
                    pl.BlockSpec((k * k, Cin), lambda n: (0, 0)),
                    pl.BlockSpec((4, Cin), lambda n: (0, 0)),
                    pl.BlockSpec((Cin, Cout), lambda n: (0, 0)),
                    pl.BlockSpec((1, Cout), lambda n: (0, 0)),
                ],
                out_specs=pl.BlockSpec((1, Ho, Wo, Cout), lambda n: (n, 0, 0, 0)),
            ),
            compiler_params=pltpu.CompilerParams(
                dimension_semantics=("parallel",)),
        )(xpad, w1, w2, bn_g, wp, bp_g)

    return jnp.transpose(out, (0, 3, 1, 2))                        # NCHW


# ------------- pure-JAX reference (mirrors PyTorch eval forward) -------------
def reference(x_nchw, params, *, kernel_size, stride, padding, dilation, eps=1e-3):
    Cin = x_nchw.shape[1]
    k, s, p = kernel_size, stride, padding
    x = jnp.transpose(x_nchw, (0, 2, 3, 1))

    def dw(x, w_pt, b, dil):
        w_hwio = jnp.transpose(w_pt, (2, 3, 1, 0))                 # (k, k, 1, Cin)
        y = lax.conv_general_dilated(
            x, w_hwio, window_strides=(s, s), padding=[(p, p), (p, p)],
            rhs_dilation=(dil, dil),
            dimension_numbers=("NHWC", "HWIO", "NHWC"),
            feature_group_count=Cin)
        return y + b.reshape(1, 1, 1, -1)

    def bn(y, gamma, beta, mean, var):
        return (y - mean) / jnp.sqrt(var + eps) * gamma + beta

    x1 = jax.nn.relu(bn(dw(x, params["w1"], params["b1"], 1),
                        params["gamma1"], params["beta1"],
                        params["mean1"], params["var1"]))
    x2 = jax.nn.relu(bn(dw(x, params["w2"], params["b2"], dilation),
                        params["gamma2"], params["beta2"],
                        params["mean2"], params["var2"]))
    y = x1 + x2
    wpw = jnp.transpose(params["wp"], (2, 3, 1, 0))                # (1, 1, Cin, Cout)
    out = lax.conv_general_dilated(
        y, wpw, window_strides=(1, 1), padding=[(0, 0), (0, 0)],
        dimension_numbers=("NHWC", "HWIO", "NHWC"))
    out = out + params["bp"].reshape(1, 1, 1, -1)
    return jnp.transpose(out, (0, 3, 1, 2))


if __name__ == "__main__":
    # x1 + x2 requires dilation*(k-1) == (k-1), so dilation = 1 with k = 3.
    N, Cin, Cout, H, W = 2, 8, 16, 16, 16
    k, stride, padding, dilation = 3, 1, 1, 1

    key = jax.random.PRNGKey(0)
    ks = jax.random.split(key, 16)
    params = {
        "w1": 0.2 * jax.random.normal(ks[0], (Cin, 1, k, k), jnp.float32),
        "b1": 0.1 * jax.random.normal(ks[1], (Cin,), jnp.float32),
        "w2": 0.2 * jax.random.normal(ks[2], (Cin, 1, k, k), jnp.float32),
        "b2": 0.1 * jax.random.normal(ks[3], (Cin,), jnp.float32),
        "gamma1": 1.0 + 0.1 * jax.random.normal(ks[4], (Cin,), jnp.float32),
        "beta1": 0.1 * jax.random.normal(ks[5], (Cin,), jnp.float32),
        "mean1": 0.1 * jax.random.normal(ks[6], (Cin,), jnp.float32),
        "var1": 0.5 + jnp.abs(jax.random.normal(ks[7], (Cin,), jnp.float32)),
        "gamma2": 1.0 + 0.1 * jax.random.normal(ks[8], (Cin,), jnp.float32),
        "beta2": 0.1 * jax.random.normal(ks[9], (Cin,), jnp.float32),
        "mean2": 0.1 * jax.random.normal(ks[10], (Cin,), jnp.float32),
        "var2": 0.5 + jnp.abs(jax.random.normal(ks[11], (Cin,), jnp.float32)),
        "wp": 0.2 * jax.random.normal(ks[12], (Cout, Cin, 1, 1), jnp.float32),
        "bp": 0.1 * jax.random.normal(ks[13], (Cout,), jnp.float32),
    }

    x_nchw = jax.random.normal(ks[14], (N, Cin, H, W), jnp.float32)  # PyTorch layout

    ref = reference(x_nchw, params, kernel_size=k, stride=stride,
                    padding=padding, dilation=dilation, eps=1e-3)

    out = multi_dilation_dwsep_conv2d(
        x_nchw, params, kernel_size=k, stride=stride,
        padding=padding, dilation=dilation, eps=1e-3)
    out = jax.block_until_ready(out)
    np.testing.assert_allclose(np.asarray(out), np.asarray(ref),
                               rtol=1e-4, atol=1e-4)

    # Also exercise the multi-image-per-grid-step path (amortizes per-step
    # pipeline overhead; review item 5).
    out2 = multi_dilation_dwsep_conv2d(
        x_nchw, params, kernel_size=k, stride=stride,
        padding=padding, dilation=dilation, eps=1e-3, batch_block=2)
    out2 = jax.block_until_ready(out2)
    np.testing.assert_allclose(np.asarray(out2), np.asarray(ref),
                               rtol=1e-4, atol=1e-4)

    print("KERNEL_OK")
</pallas_src>

<mosaic_0001>
module attributes {stable_mosaic.version = 11 : i64} {
  func.func @_mddsc_fused_kernel(%arg0: i32, %arg1: memref<1x18x144xf32, #tpu.memory_space<vmem>>, %arg2: memref<9x128xf32, #tpu.memory_space<vmem>>, %arg3: memref<9x128xf32, #tpu.memory_space<vmem>>, %arg4: memref<4x128xf32, #tpu.memory_space<vmem>>, %arg5: memref<128x256xf32, #tpu.memory_space<vmem>>, %arg6: memref<1x256xf32, #tpu.memory_space<vmem>>, %arg7: memref<1x16x256xf32, #tpu.memory_space<vmem>>) attributes {dimension_semantics = [#tpu.dimension_semantics<parallel>], iteration_bounds = array<i64: 2>, scalar_prefetch = 0 : i64, scratch_operands = 0 : i64, tpu.core_type = #tpu.core_type<tc>, window_params = [{transform_indices = @transform_0, window_bounds = array<i64: 1, 18, 144>}, {pipeline_mode = #tpu.pipeline_mode<synchronous>, transform_indices = @transform_1, window_bounds = array<i64: 9, 128>}, {pipeline_mode = #tpu.pipeline_mode<synchronous>, transform_indices = @transform_2, window_bounds = array<i64: 9, 128>}, {pipeline_mode = #tpu.pipeline_mode<synchronous>, transform_indices = @transform_3, window_bounds = array<i64: 4, 128>}, {pipeline_mode = #tpu.pipeline_mode<synchronous>, transform_indices = @transform_4, window_bounds = array<i64: 128, 256>}, {pipeline_mode = #tpu.pipeline_mode<synchronous>, transform_indices = @transform_5, window_bounds = array<i64: 1, 256>}, {transform_indices = @transform_6, window_bounds = array<i64: 1, 16, 256>}]} {
    %c0 = arith.constant 0 : index
    %c0_0 = arith.constant 0 : index
    %0 = vector.load %arg5[%c0, %c0_0] : memref<128x256xf32, #tpu.memory_space<vmem>>, vector<128x256xf32>
    %c0_1 = arith.constant 0 : index
    %c0_2 = arith.constant 0 : index
    %1 = vector.load %arg6[%c0_1, %c0_2] : memref<1x256xf32, #tpu.memory_space<vmem>>, vector<1x256xf32>
    %c0_3 = arith.constant 0 : index
    %c0_4 = arith.constant 0 : index
    %2 = vector.load %arg4[%c0_3, %c0_4] : memref<4x128xf32, #tpu.memory_space<vmem>>, vector<1x128xf32>
    %c1 = arith.constant 1 : index
    %c0_5 = arith.constant 0 : index
    %3 = vector.load %arg4[%c1, %c0_5] : memref<4x128xf32, #tpu.memory_space<vmem>>, vector<1x128xf32>
    %c2 = arith.constant 2 : index
    %c0_6 = arith.constant 0 : index
    %4 = vector.load %arg4[%c2, %c0_6] : memref<4x128xf32, #tpu.memory_space<vmem>>, vector<1x128xf32>
    %c3 = arith.constant 3 : index
    %c0_7 = arith.constant 0 : index
    %5 = vector.load %arg4[%c3, %c0_7] : memref<4x128xf32, #tpu.memory_space<vmem>>, vector<1x128xf32>
    %c0_8 = arith.constant 0 : index
    %c0_9 = arith.constant 0 : index
    %c0_10 = arith.constant 0 : index
    %6 = vector.load %arg1[%c0_8, %c0_9, %c0_10] : memref<1x18x144xf32, #tpu.memory_space<vmem>>, vector<1x16x128xf32>
    %7 = vector.shape_cast %6 : vector<1x16x128xf32> to vector<16x128xf32>
    %c0_11 = arith.constant 0 : index
    %c0_12 = arith.constant 0 : index
    %8 = vector.load %arg2[%c0_11, %c0_12] : memref<9x128xf32, #tpu.memory_space<vmem>>, vector<1x128xf32>
    %c0_13 = arith.constant 0 : index
    %c0_14 = arith.constant 0 : index
    %9 = vector.load %arg3[%c0_13, %c0_14] : memref<9x128xf32, #tpu.memory_space<vmem>>, vector<1x128xf32>
    %10 = vector.broadcast %8 : vector<1x128xf32> to vector<16x128xf32>
    %11 = arith.mulf %7, %10 : vector<16x128xf32>
    %12 = vector.broadcast %9 : vector<1x128xf32> to vector<16x128xf32>
    %13 = arith.mulf %7, %12 : vector<16x128xf32>
    %c0_15 = arith.constant 0 : index
    %c0_16 = arith.constant 0 : index
    %c8 = arith.constant 8 : index
    %14 = vector.load %arg1[%c0_15, %c0_16, %c8] : memref<1x18x144xf32, #tpu.memory_space<vmem>>, vector<1x16x128xf32>
    %15 = vector.shape_cast %14 : vector<1x16x128xf32> to vector<16x128xf32>
    %c1_17 = arith.constant 1 : index
    %c0_18 = arith.constant 0 : index
    %16 = vector.load %arg2[%c1_17, %c0_18] : memref<9x128xf32, #tpu.memory_space<vmem>>, vector<1x128xf32>
    %c1_19 = arith.constant 1 : index
    %c0_20 = arith.constant 0 : index
    %17 = vector.load %arg3[%c1_19, %c0_20] : memref<9x128xf32, #tpu.memory_space<vmem>>, vector<1x128xf32>
    %18 = vector.broadcast %16 : vector<1x128xf32> to vector<16x128xf32>
    %19 = arith.mulf %15, %18 : vector<16x128xf32>
    %20 = arith.addf %11, %19 : vector<16x128xf32>
    %21 = vector.broadcast %17 : vector<1x128xf32> to vector<16x128xf32>
    %22 = arith.mulf %15, %21 : vector<16x128xf32>
    %23 = arith.addf %13, %22 : vector<16x128xf32>
    %c0_21 = arith.constant 0 : index
    %c0_22 = arith.constant 0 : index
    %c16 = arith.constant 16 : index
    %24 = vector.load %arg1[%c0_21, %c0_22, %c16] : memref<1x18x144xf32, #tpu.memory_space<vmem>>, vector<1x16x128xf32>
    %25 = vector.shape_cast %24 : vector<1x16x128xf32> to vector<16x128xf32>
    %c2_23 = arith.constant 2 : index
    %c0_24 = arith.constant 0 : index
    %26 = vector.load %arg2[%c2_23, %c0_24] : memref<9x128xf32, #tpu.memory_space<vmem>>, vector<1x128xf32>
    %c2_25 = arith.constant 2 : index
    %c0_26 = arith.constant 0 : index
    %27 = vector.load %arg3[%c2_25, %c0_26] : memref<9x128xf32, #tpu.memory_space<vmem>>, vector<1x128xf32>
    %28 = vector.broadcast %26 : vector<1x128xf32> to vector<16x128xf32>
    %29 = arith.mulf %25, %28 : vector<16x128xf32>
    %30 = arith.addf %20, %29 : vector<16x128xf32>
    %31 = vector.broadcast %27 : vector<1x128xf32> to vector<16x128xf32>
    %32 = arith.mulf %25, %31 : vector<16x128xf32>
    %33 = arith.addf %23, %32 : vector<16x128xf32>
    %c0_27 = arith.constant 0 : index
    %c1_28 = arith.constant 1 : index
    %c0_29 = arith.constant 0 : index
    %34 = vector.load %arg1[%c0_27, %c1_28, %c0_29] : memref<1x18x144xf32, #tpu.memory_space<vmem>>, vector<1x16x128xf32>
    %35 = vector.shape_cast %34 : vector<1x16x128xf32> to vector<16x128xf32>
    %c3_30 = arith.constant 3 : index
    %c0_31 = arith.constant 0 : index
    %36 = vector.load %arg2[%c3_30, %c0_31] : memref<9x128xf32, #tpu.memory_space<vmem>>, vector<1x128xf32>
    %c3_32 = arith.constant 3 : index
    %c0_33 = arith.constant 0 : index
    %37 = vector.load %arg3[%c3_32, %c0_33] : memref<9x128xf32, #tpu.memory_space<vmem>>, vector<1x128xf32>
    %38 = vector.broadcast %36 : vector<1x128xf32> to vector<16x128xf32>
    %39 = arith.mulf %35, %38 : vector<16x128xf32>
    %40 = arith.addf %30, %39 : vector<16x128xf32>
    %41 = vector.broadcast %37 : vector<1x128xf32> to vector<16x128xf32>
    %42 = arith.mulf %35, %41 : vector<16x128xf32>
    %43 = arith.addf %33, %42 : vector<16x128xf32>
    %c0_34 = arith.constant 0 : index
    %c1_35 = arith.constant 1 : index
    %c8_36 = arith.constant 8 : index
    %44 = vector.load %arg1[%c0_34, %c1_35, %c8_36] : memref<1x18x144xf32, #tpu.memory_space<vmem>>, vector<1x16x128xf32>
    %45 = vector.shape_cast %44 : vector<1x16x128xf32> to vector<16x128xf32>
    %c4 = arith.constant 4 : index
    %c0_37 = arith.constant 0 : index
    %46 = vector.load %arg2[%c4, %c0_37] : memref<9x128xf32, #tpu.memory_space<vmem>>, vector<1x128xf32>
    %c4_38 = arith.constant 4 : index
    %c0_39 = arith.constant 0 : index
    %47 = vector.load %arg3[%c4_38, %c0_39] : memref<9x128xf32, #tpu.memory_space<vmem>>, vector<1x128xf32>
    %48 = vector.broadcast %46 : vector<1x128xf32> to vector<16x128xf32>
    %49 = arith.mulf %45, %48 : vector<16x128xf32>
    %50 = arith.addf %40, %49 : vector<16x128xf32>
    %51 = vector.broadcast %47 : vector<1x128xf32> to vector<16x128xf32>
    %52 = arith.mulf %45, %51 : vector<16x128xf32>
    %53 = arith.addf %43, %52 : vector<16x128xf32>
    %c0_40 = arith.constant 0 : index
    %c1_41 = arith.constant 1 : index
    %c16_42 = arith.constant 16 : index
    %54 = vector.load %arg1[%c0_40, %c1_41, %c16_42] : memref<1x18x144xf32, #tpu.memory_space<vmem>>, vector<1x16x128xf32>
    %55 = vector.shape_cast %54 : vector<1x16x128xf32> to vector<16x128xf32>
    %c5 = arith.constant 5 : index
    %c0_43 = arith.constant 0 : index
    %56 = vector.load %arg2[%c5, %c0_43] : memref<9x128xf32, #tpu.memory_space<vmem>>, vector<1x128xf32>
    %c5_44 = arith.constant 5 : index
    %c0_45 = arith.constant 0 : index
    %57 = vector.load %arg3[%c5_44, %c0_45] : memref<9x128xf32, #tpu.memory_space<vmem>>, vector<1x128xf32>
    %58 = vector.broadcast %56 : vector<1x128xf32> to vector<16x128xf32>
    %59 = arith.mulf %55, %58 : vector<16x128xf32>
    %60 = arith.addf %50, %59 : vector<16x128xf32>
    %61 = vector.broadcast %57 : vector<1x128xf32> to vector<16x128xf32>
    %62 = arith.mulf %55, %61 : vector<16x128xf32>
    %63 = arith.addf %53, %62 : vector<16x128xf32>
    %c0_46 = arith.constant 0 : index
    %c2_47 = arith.constant 2 : index
    %c0_48 = arith.constant 0 : index
    %64 = vector.load %arg1[%c0_46, %c2_47, %c0_48] : memref<1x18x144xf32, #tpu.memory_space<vmem>>, vector<1x16x128xf32>
    %65 = vector.shape_cast %64 : vector<1x16x128xf32> to vector<16x128xf32>
    %c6 = arith.constant 6 : index
    %c0_49 = arith.constant 0 : index
    %66 = vector.load %arg2[%c6, %c0_49] : memref<9x128xf32, #tpu.memory_space<vmem>>, vector<1x128xf32>
    %c6_50 = arith.constant 6 : index
    %c0_51 = arith.constant 0 : index
    %67 = vector.load %arg3[%c6_50, %c0_51] : memref<9x128xf32, #tpu.memory_space<vmem>>, vector<1x128xf32>
    %68 = vector.broadcast %66 : vector<1x128xf32> to vector<16x128xf32>
    %69 = arith.mulf %65, %68 : vector<16x128xf32>
    %70 = arith.addf %60, %69 : vector<16x128xf32>
    %71 = vector.broadcast %67 : vector<1x128xf32> to vector<16x128xf32>
    %72 = arith.mulf %65, %71 : vector<16x128xf32>
    %73 = arith.addf %63, %72 : vector<16x128xf32>
    %c0_52 = arith.constant 0 : index
    %c2_53 = arith.constant 2 : index
    %c8_54 = arith.constant 8 : index
    %74 = vector.load %arg1[%c0_52, %c2_53, %c8_54] : memref<1x18x144xf32, #tpu.memory_space<vmem>>, vector<1x16x128xf32>
    %75 = vector.shape_cast %74 : vector<1x16x128xf32> to vector<16x128xf32>
    %c7 = arith.constant 7 : index
    %c0_55 = arith.constant 0 : index
    %76 = vector.load %arg2[%c7, %c0_55] : memref<9x128xf32, #tpu.memory_space<vmem>>, vector<1x128xf32>
    %c7_56 = arith.constant 7 : index
    %c0_57 = arith.constant 0 : index
    %77 = vector.load %arg3[%c7_56, %c0_57] : memref<9x128xf32, #tpu.memory_space<vmem>>, vector<1x128xf32>
    %78 = vector.broadcast %76 : vector<1x128xf32> to vector<16x128xf32>
    %79 = arith.mulf %75, %78 : vector<16x128xf32>
    %80 = arith.addf %70, %79 : vector<16x128xf32>
    %81 = vector.broadcast %77 : vector<1x128xf32> to vector<16x128xf32>
    %82 = arith.mulf %75, %81 : vector<16x128xf32>
    %83 = arith.addf %73, %82 : vector<16x128xf32>
    %c0_58 = arith.constant 0 : index
    %c2_59 = arith.constant 2 : index
    %c16_60 = arith.constant 16 : index
    %84 = vector.load %arg1[%c0_58, %c2_59, %c16_60] : memref<1x18x144xf32, #tpu.memory_space<vmem>>, vector<1x16x128xf32>
    %85 = vector.shape_cast %84 : vector<1x16x128xf32> to vector<16x128xf32>
    %c8_61 = arith.constant 8 : index
    %c0_62 = arith.constant 0 : index
    %86 = vector.load %arg2[%c8_61, %c0_62] : memref<9x128xf32, #tpu.memory_space<vmem>>, vector<1x128xf32>
    %c8_63 = arith.constant 8 : index
    %c0_64 = arith.constant 0 : index
    %87 = vector.load %arg3[%c8_63, %c0_64] : memref<9x128xf32, #tpu.memory_space<vmem>>, vector<1x128xf32>
    %88 = vector.broadcast %86 : vector<1x128xf32> to vector<16x128xf32>
    %89 = arith.mulf %85, %88 : vector<16x128xf32>
    %90 = arith.addf %80, %89 : vector<16x128xf32>
    %91 = vector.broadcast %87 : vector<1x128xf32> to vector<16x128xf32>
    %92 = arith.mulf %85, %91 : vector<16x128xf32>
    %93 = arith.addf %83, %92 : vector<16x128xf32>
    %94 = vector.broadcast %2 : vector<1x128xf32> to vector<16x128xf32>
    %95 = arith.mulf %90, %94 : vector<16x128xf32>
    %96 = vector.broadcast %3 : vector<1x128xf32> to vector<16x128xf32>
    %97 = arith.addf %95, %96 : vector<16x128xf32>
    %cst = arith.constant 0.000000e+00 : f32
    %98 = vector.broadcast %cst : f32 to vector<16x128xf32>
    %99 = arith.maximumf %97, %98 : vector<16x128xf32>
    %100 = vector.broadcast %4 : vector<1x128xf32> to vector<16x128xf32>
    %101 = arith.mulf %93, %100 : vector<16x128xf32>
    %102 = vector.broadcast %5 : vector<1x128xf32> to vector<16x128xf32>
    %103 = arith.addf %101, %102 : vector<16x128xf32>
    %cst_65 = arith.constant 0.000000e+00 : f32
    %104 = vector.broadcast %cst_65 : f32 to vector<16x128xf32>
    %105 = arith.maximumf %103, %104 : vector<16x128xf32>
    %106 = arith.addf %99, %105 : vector<16x128xf32>
    %cst_66 = arith.constant dense<0.000000e+00> : vector<16x256xf32>
    %107 = tpu.matmul %106, %0, %cst_66 {dimension_numbers = #tpu.dot_dimension_numbers<[1], [0], [0], [1], [0, 0, 1, 1], [], []>} : vector<16x128xf32>, vector<128x256xf32>, vector<16x256xf32> -> vector<16x256xf32>
    %108 = vector.broadcast %1 : vector<1x256xf32> to vector<16x256xf32>
    %109 = arith.addf %107, %108 : vector<16x256xf32>
    %c0_67 = arith.constant 0 : index
    %c0_68 = arith.constant 0 : index
    %c0_69 = arith.constant 0 : index
    %110 = vector.load %arg7[%c0_67, %c0_68, %c0_69] : memref<1x16x256xf32, #tpu.memory_space<vmem>>, vector<1x16x256xf32>
    %111 = vector.shape_cast %110 : vector<1x16x256xf32> to vector<16x256xf32>
    %112 = vector.shape_cast %109 : vector<16x256xf32> to vector<1x16x256xf32>
    tpu.vector_store %arg7[%c0_67, %c0_68, %c0_69], %112 {strides = array<i32>} : memref<1x16x256xf32, #tpu.memory_space<vmem>>, vector<1x16x256xf32>,
    return
  }
  func.func @transform_0(%arg0: i32) -> (i32, i32, i32) {
    %c0_i32 = arith.constant 0 : i32
    %c0_i32_0 = arith.constant 0 : i32
    %c0_i32_1 = arith.constant 0 : i32
    return %arg0, %c0_i32, %c0_i32_0 : i32, i32, i32
  }
  func.func @transform_1(%arg0: i32) -> (i32, i32) {
    %c0_i32 = arith.constant 0 : i32
    %c0_i32_0 = arith.constant 0 : i32
    %c0_i32_1 = arith.constant 0 : i32
    return %c0_i32, %c0_i32_0 : i32, i32
  }
  func.func @transform_2(%arg0: i32) -> (i32, i32) {
    %c0_i32 = arith.constant 0 : i32
    %c0_i32_0 = arith.constant 0 : i32
    %c0_i32_1 = arith.constant 0 : i32
    return %c0_i32, %c0_i32_0 : i32, i32
  }
  func.func @transform_3(%arg0: i32) -> (i32, i32) {
    %c0_i32 = arith.constant 0 : i32
    %c0_i32_0 = arith.constant 0 : i32
    %c0_i32_1 = arith.constant 0 : i32
    return %c0_i32, %c0_i32_0 : i32, i32
  }
  func.func @transform_4(%arg0: i32) -> (i32, i32) {
    %c0_i32 = arith.constant 0 : i32
    %c0_i32_0 = arith.constant 0 : i32
    %c0_i32_1 = arith.constant 0 : i32
    return %c0_i32, %c0_i32_0 : i32, i32
  }
  func.func @transform_5(%arg0: i32) -> (i32, i32) {
    %c0_i32 = arith.constant 0 : i32
    %c0_i32_0 = arith.constant 0 : i32
    %c0_i32_1 = arith.constant 0 : i32
    return %c0_i32, %c0_i32_0 : i32, i32
  }
  func.func @transform_6(%arg0: i32) -> (i32, i32, i32) {
    %c0_i32 = arith.constant 0 : i32
    %c0_i32_0 = arith.constant 0 : i32
    %c0_i32_1 = arith.constant 0 : i32
    return %arg0, %c0_i32, %c0_i32_0 : i32, i32, i32
  }
}

</mosaic_0001>

<bundles_post_ra>
// kernel: tpu_custom_call.1
= control target key start
LH: loop header
LB: loop body
LE: loop exit
PB: predicated region body
PF: predicated region fallthrough
CT: control target
= control target key end

     0   :  { %11 = vsyncpa [#allocation3], 0  ;;  %s1872_s0 = inlined_call_operand.vmem [shape: f32[2,18,144], index: 0, kind: input, shape index: {}]   ;;  %s1873_s1 = inlined_call_operand.vmem [shape: f32[9,128], index: 1, kind: input, shape index: {}]   ;;  %s1874_s2 = inlined_call_operand.vmem [shape: f32[9,128], index: 2, kind: input, shape index: {}]   ;;  %s1875_s3 = inlined_call_operand.vmem [shape: f32[4,128], index: 3, kind: input, shape index: {}]   ;;  %s1876_s4 = inlined_call_operand.hbm [shape: f32[128,256], index: 4, kind: input, shape index: {}]   ;;  %s1877_s5 = inlined_call_operand.vmem [shape: f32[1,256], index: 5, kind: input, shape index: {}]   ;;  %s1878_s6 = inlined_call_operand.hbm [shape: f32[2,16,256], index: 6, kind: output, shape index: {}]  }
   0x1   :  { %12 = vsyncpa [#allocation4], 0 }
   0x2   :  { %14 = vsyncpa [#allocation4 + $0x1], 0  ;;  %s1274_s21 = smov 0   ;;  %s1276_s22 = smov 0  }
   0x3   :  { %s1278_s23 = smov 0   ;;  %s1280_s24 = smov 0  }
   0x4 LB: > { %s1295_s25 = sadd.s32 4294967295, %s1229_s24   ;;  %s1007_s26 = sadd.s32 4294967294, %s1229_s24   ;;  %s1229_s24 = sphi %s1280_s24, %s1884_s24   ;;  %s1225_s23 = sphi %s1278_s23, %s1883_s23   ;;  %s1221_s22 = sphi %s1276_s22, %s1882_s22   ;;  %s1217_s21 = sphi %s1274_s21, %s1881_s21  }
   0x5   : > { %s1299_s27 = sadd.s32 1, %s1229_s24   ;;  %s158_s28 = sadd.s32 1, %s1225_s23 }
   0x6   : > { %s155_s29 = ssub.s32 %s1229_s24, %s1299_s27  ;;  %p168_p0 = scmp.ne.s32.totalorder %s1225_s23, %s1221_s22 }
   0x7   : > { %p156_p1 = scmp.eq.s32.totalorder %s155_s29, 0  ;;  %p169_p2 = scmp.eq.s32.totalorder %s1295_s25, 1 }
   0x8   : > { %p174_p3 = scmp.ne.s32.totalorder %s1221_s22, %s1217_s21  ;;  %p175_p4 = scmp.eq.s32.totalorder %s1007_s26, 1 }
   0x9   : > { %s1310_s30 = scalar_select %p156_p1, %s1225_s23, %s158_s28  }
   0xa   : > { %p1312_p5 = por %p169_p2, %p168_p0  ;;  %p1316_p6 = por %p175_p4, %p174_p3 }
   0xb   : > { %p1008_p7 = scmp.ge.s32.totalorder %s1229_s24, 1  ;;  %p182_p8 = scmp.lt.s32.totalorder %s1229_s24, 3 }
   0xc   : > { %p1068_p9 = scmp.eq.s32.totalorder %s1295_s25, 0  ;;  %s202_s11 = sshll.u32 %s1876_s4, 4  ;;  %s203_s11 = int_to_ptr.hbm [resolvable:$true] %s202_s11 }
   0xd   : > { %p183_p10 = pnand %p1008_p7, %p182_p8  ;;  %s1231_s12 = smov [#allocation2]  }
   0xe   : > { %s204_s13 = sshll.u32 %s1231_s12, 4  ;;  %s1232_s14 = smov 256   ;;  %s205_s13 = int_to_ptr.vmem [resolvable:$true] %s204_s13 }
   0xf   : > { %p1060_p11 = pneg %p183_p10  ;;  %s1233_s15 = smov 16  }
  0x10   : > { %231 = sbr.rel (%p183_p10) target bundleno = 521 (0x209), region = 44 }
  0x11   : > { %p1061_p12 = pnand %p1068_p9, %p1060_p11 }
  0x13   : > { %1063 = dma.hbm_to_vmem [thread:$0]  (!%p1061_p12), %s203_s11, 4096, %s205_s13, [#allocation3], %s1232_s14, %s1232_s14, %s1233_s15  }
  0x15   : > { %1208 = dma.done.wait (%p1068_p9), [#allocation3], 4096  }
  0x16   : > { %1210 = vsyncadd (%p1068_p9), [#allocation3], 4294963200  ;;  %v1111_v0 = vld [vmem:[%s1873_s1 + $0x1] ss:$0 sm:$0xff]  ;;  %v1112_v1 = vld [vmem:[%s1873_s1 + $0x2] ss:$0 sm:$0xff] }
  0x17   : > { %s1234_s20 = smov 8   ;;  %s1235_s26 = smov 16   ;;  %v1117_v2 = vld [vmem:[%s1873_s1 + $0x4] ss:$0 sm:$0xff]  ;;  %v1113_v3 = vld [vmem:[%s1874_s2 + $0x1] ss:$0 sm:$0xff] }
  0x18   : > { %320 = vrot.lane.b32.xlu0 %v1111_v0, %s1234_s20  ;;  %377 = vrot.lane.b32.xlu1 %v1112_v1, %s1235_s26  ;;  %v1114_v4 = vld [vmem:[%s1874_s2 + $0x2] ss:$0 sm:$0xff]  ;;  %v1118_v5 = vld [vmem:[%s1874_s2 + $0x4] ss:$0 sm:$0xff]  ;;  %p262_p13 = scmp.lt.s32.totalorder %s1295_s25, 1  ;;  %s1237_s19 = smov 112  }
  0x19   : > { %473 = vrot.lane.b32.xlu2 %v1117_v2, %s1234_s20  ;;  %v1116_v6 = vld [vmem:[%s1873_s1 + $0x5] ss:$0 sm:$0xff]  ;;  %v1120_v8 = vld [vmem:[%s1873_s1 + $0x7] ss:$0 sm:$0xff]  ;;  %v1121_v10 = vld [vmem:[%s1873_s1 + $0x8] ss:$0 sm:$0xff] }
  0x1a   : > { %v1115_v7 = vld [vmem:[%s1874_s2 + $0x5] ss:$0 sm:$0xff]  ;;  %v1119_v9 = vld [vmem:[%s1874_s2 + $0x7] ss:$0 sm:$0xff]  ;;  %v1122_v11 = vld [vmem:[%s1874_s2 + $0x8] ss:$0 sm:$0xff] }
  0x1b   : > { %s263_s14 = scalar_select %p262_p13, %s1295_s25, 1  ;;  %vm441_vm0 = vcmask 1046528   ;;  %vm648_vm1 = vcmask 1045504   ;;  %vm339_vm2 = vcmask 982016   ;;  %vm396_vm3 = vcmask 916480  }
  0x1c   : > { %s259_s13 = sand.u32 1, %s1221_s22  }
  0x1d   : > { %s1053_s15 = smul.u32 48, %s263_s14  ;;  %s1013_s16 = sshll.u32 %s259_s13, 5 }
  0x1e   : > { %s261_s17 = scalar_lea.vmem [#allocation5], %s1013_s16  ;;  %s918_s10 = scalar_lea.sflag [#allocation4], %s259_s13 }
  0x1f   : > { %s1379_s18 = scalar_lea.vmem %s1872_s0, %s1053_s15  ;;  %s930_s29 = sshll.u32 %s261_s17, 4  ;;  %s931_s29 = int_to_ptr.vmem [resolvable:$true] %s930_s29 }
  0x20   : > { %348 = vrot.lane.b32.xlu0 %v1113_v3, %s1234_s20  ;;  %405 = vrot.lane.b32.xlu1 %v1114_v4, %s1235_s26  ;;  %v1382_v12 = vld [vmem:[%s1379_s18 + $0x18] sm:$0xff]  ;;  %v1385_v13 = vld [vmem:[%s1379_s18 + $0x10] sm:$0xff]  ;;  %s1183_s15 = scalar_lea.hbm %s1878_s6, 64 }
  0x21   : > { %514 = vrot.lane.b32.xlu2 %v1118_v5, %s1234_s20  ;;  %v1404_v26 = vld [vmem:[%s1379_s18] sm:$0xff]  ;;  %v314_v27 = vld [vmem:[%s1379_s18 + $0x8] sm:$0xff] }
  0x22   : > { %v1415_v32 = vld [vmem:[%s1379_s18 + $0x20] sm:$0x1]  ;;  %v468_v41 = vld [vmem:[%s1379_s18 + $0x28] sm:$0x1] }
  0x28   : > { %557 = vrot.lane.b32.xlu0 %v1116_v6, %s1235_s26  ;;  %598 = vrot.lane.b32.xlu1 %v1115_v7, %s1235_s26 }
  0x29   : > { %680 = vrot.lane.b32.xlu2 %v1120_v8, %s1234_s20 }
  0x30   : > { %721 = vrot.lane.b32.xlu0 %v1119_v9, %s1234_s20  ;;  %764 = vrot.lane.b32.xlu1 %v1121_v10, %s1235_s26  ;;  %s1236_s20 = smov 120   ;;  %v1489_v10 = vld [vmem:[%s1379_s18 + $0x8] sm:$0xfe] }
  0x31   : > { %805 = vrot.lane.b32.xlu2 %v1122_v11, %s1235_s26 }
  0x73   : > { %v1409_v31 = vpop.permute.xlu2 %473 }
  0x74   : > { %v1420_v35 = vmul.f32 %v1409_v31, %v1385_v13  ;;  %v480_v36 = vmul.f32 %v1409_v31, %v1415_v32  ;;  %v479_v49 = vmul.f32 %v1409_v31, %v1382_v12  ;;  %v481_v50 = vmul.f32 %v1409_v31, %v468_v41 }
  0x76   : > { %v489_v39 = vrot.slane %v1420_v35, 1  ;;  %v494_v40 = vrot.slane %v480_v36, 1  ;;  %v492_v57 = vrot.slane %v479_v49, 1  ;;  %v496_v58 = vrot.slane %v481_v50, 1  ;;  %v675_v35 = vld [vmem:[%s1379_s18 + $0x28] sm:$0x3] }
  0x78   : > { %v495_v45 = vsel %vm441_vm0, %v489_v39, %v494_v40  ;;  %v497_v3 = vsel %vm441_vm0, %v492_v57, %v496_v58 }
  0x7b   : > { %v1428_v38 = vpop.permute.xlu2 %514 }
  0x7c   : > { %v1434_v42 = vmul.f32 %v1428_v38, %v1385_v13  ;;  %v521_v43 = vmul.f32 %v1428_v38, %v1415_v32  ;;  %v1443_v47 = vmul.f32 %v1428_v38, %v1382_v12  ;;  %v522_v48 = vmul.f32 %v1428_v38, %v468_v41 }
  0x7d   : > { %v518_v36 = vmul.f32 %v1428_v38, %v1489_v10 }
  0x7e   : > { %v530_v51 = vrot.slane %v1434_v42, 1  ;;  %v535_v52 = vrot.slane %v521_v43, 1  ;;  %v533_v53 = vrot.slane %v1443_v47, 1  ;;  %v537_v54 = vrot.slane %v522_v48, 1 }
  0x80   : > { %v536_v59 = vsel %vm441_vm0, %v530_v51, %v535_v52  ;;  %v538_v0 = vsel %vm441_vm0, %v533_v53, %v537_v54 }
  0x8a   : > { %v321_v14 = vpop.permute.xlu0 %320  ;;  %v378_v17 = vpop.permute.xlu1 %377 }
  0x8b   : > { %v326_v15 = vmul.f32 %v321_v14, %v1382_v12  ;;  %v325_v16 = vmul.f32 %v321_v14, %v1385_v13  ;;  %v382_v18 = vmul.f32 %v378_v17, %v1385_v13  ;;  %v383_v25 = vmul.f32 %v378_v17, %v1382_v12 }
  0x8c   : > { %v323_v29 = vmul.f32 %v321_v14, %v1404_v26  ;;  %v324_v30 = vmul.f32 %v321_v14, %v314_v27  ;;  %v380_v33 = vmul.f32 %v378_v17, %v1404_v26  ;;  %v381_v44 = vmul.f32 %v378_v17, %v314_v27 }
  0x8d   : > { %337 = vrot.lane.b32.xlu1 %v326_v15, %s1236_s20  ;;  %335 = vrot.lane.b32.xlu0 %v325_v16, %s1236_s20  ;;  %v1498_v15 = vld [vmem:[%s1379_s18] sm:$0xfe]  ;;  %v477_v17 = vmul.f32 %v1409_v31, %v1489_v10 }
  0x92   : > { %v349_v19 = vpop.permute.xlu0 %348  ;;  %v406_v22 = vpop.permute.xlu1 %405 }
  0x93   : > { %v353_v20 = vmul.f32 %v349_v19, %v1385_v13  ;;  %v354_v21 = vmul.f32 %v349_v19, %v1382_v12  ;;  %v411_v23 = vmul.f32 %v406_v22, %v1382_v12  ;;  %v410_v24 = vmul.f32 %v406_v22, %v1385_v13 }
  0x94   : > { %v351_v28 = vmul.f32 %v349_v19, %v1404_v26  ;;  %v352_v34 = vmul.f32 %v349_v19, %v314_v27  ;;  %v408_v37 = vmul.f32 %v406_v22, %v1404_v26  ;;  %v409_v46 = vmul.f32 %v406_v22, %v314_v27  ;;  %v1518_v22 = vld [vmem:[%s1379_s18 + $0x20] sm:$0x3] }
  0x95   : > { %392 = vrot.lane.b32.xlu1 %v382_v18, %s1237_s19  ;;  %363 = vrot.lane.b32.xlu2 %v353_v20, %s1236_s20  ;;  %v476_v20 = vmul.f32 %v1409_v31, %v1498_v15 }
  0x96   : > { %365 = vrot.lane.b32.xlu0 %v354_v21, %s1236_s20  ;;  %v1515_v21 = vpop.permute.xlu2 %680 }
  0x97   : > { %v488_v27 = vrot.slane %v476_v20, 1  ;;  %v1564_v50 = vmul.f32 %v1515_v21, %v1382_v12  ;;  %v688_v52 = vmul.f32 %v1515_v21, %v675_v35 }
  0x9a   : > { %v1454_v55 = vpop.permute.xlu1 %598  ;;  %v1456_v56 = vpop.permute.xlu0 %557 }
  0x9b   : > { %v1463_v60 = vmul.f32 %v1454_v55, %v1385_v13  ;;  %v605_v61 = vmul.f32 %v1454_v55, %v1415_v32  ;;  %v1469_v62 = vmul.f32 %v1456_v56, %v1385_v13  ;;  %v564_v63 = vmul.f32 %v1456_v56, %v1415_v32 }
  0x9c   : > { %v1478_v1 = vmul.f32 %v1456_v56, %v1382_v12  ;;  %v565_v2 = vmul.f32 %v1456_v56, %v468_v41  ;;  %v1507_v18 = vmul.f32 %v1454_v55, %v1382_v12  ;;  %v606_v19 = vmul.f32 %v1454_v55, %v468_v41 }
  0x9d   : > { %422 = vrot.lane.b32.xlu1 %v411_v23, %s1237_s19  ;;  %394 = vrot.lane.b32.xlu2 %v383_v25, %s1237_s19  ;;  %v614_v4 = vrot.slane %v1463_v60, 1  ;;  %v619_v5 = vrot.slane %v605_v61, 1  ;;  %v573_v6 = vrot.slane %v1469_v62, 1  ;;  %v578_v7 = vrot.slane %v564_v63, 1 }
  0x9e   : > { %420 = vrot.lane.b32.xlu0 %v410_v24, %s1237_s19  ;;  %v576_v8 = vrot.slane %v1478_v1, 1  ;;  %v580_v9 = vrot.slane %v565_v2, 1  ;;  %v491_v23 = vrot.slane %v477_v17, 1  ;;  %v617_v24 = vrot.slane %v1507_v18, 1 }
  0x9f   : > { %v620_v11 = vsel %vm441_vm0, %v614_v4, %v619_v5  ;;  %v579_v14 = vsel %vm441_vm0, %v573_v6, %v578_v7  ;;  %v621_v25 = vrot.slane %v606_v19, 1  ;;  %v703_v61 = vrot.slane %v688_v52, 2 }
  0xa0   : > { %v581_v16 = vsel %vm441_vm0, %v576_v8, %v580_v9  ;;  %v560_v2 = vmul.f32 %v1456_v56, %v1498_v15 }
  0xa1   : > { %v622_v31 = vsel %vm441_vm0, %v617_v24, %v621_v25 }
  0xa2   : > { %v1542_v41 = vpop.permute.xlu0 %721  ;;  %v765_v5 = vpop.permute.xlu1 %764  ;;  %v572_v9 = vrot.slane %v560_v2, 1 }
  0xa3   : > { %v728_v48 = vmul.f32 %v1542_v41, %v1518_v22  ;;  %v1598_v17 = vmul.f32 %v765_v5, %v1385_v13  ;;  %v771_v19 = vmul.f32 %v765_v5, %v1518_v22 }
  0xa4   : > { %v574_v20 = vsel %vm441_vm0, %v572_v9, %v573_v6 }
  0xa5   : > { %359 = vrot.lane.b32.xlu1 %v351_v28, %s1236_s20  ;;  %331 = vrot.lane.b32.xlu2 %v323_v29, %s1236_s20  ;;  %v1523_v28 = vmul.f32 %v1515_v21, %v1385_v13  ;;  %v687_v29 = vmul.f32 %v1515_v21, %v1518_v22  ;;  %v742_v58 = vrot.slane %v728_v48, 2  ;;  %v780_v62 = vrot.slane %v1598_v17, 2 }
  0xa6   : > { %333 = vrot.lane.b32.xlu0 %v324_v30, %s1236_s20  ;;  %v493_v30 = vsel %vm441_vm0, %v491_v23, %v492_v57  ;;  %v602_v23 = vmul.f32 %v1454_v55, %v1489_v10  ;;  %v785_v6 = vrot.slane %v771_v19, 2  ;;  %v1124_v19 = vld [vmem:[%s1874_s2] ss:$0 sm:$0xff] }
  0xa7   : > { %v701_v40 = vrot.slane %v687_v29, 2 }
  0xa8   : > { %v616_v29 = vrot.slane %v602_v23, 1 }
  0xad   : > { %388 = vrot.lane.b32.xlu1 %v380_v33, %s1237_s19  ;;  %361 = vrot.lane.b32.xlu2 %v352_v34, %s1236_s20  ;;  %v517_v33 = vmul.f32 %v1428_v38, %v1498_v15  ;;  %v490_v34 = vsel %vm441_vm0, %v488_v27, %v489_v39  ;;  %v729_v38 = vmul.f32 %v1542_v41, %v675_v35  ;;  %v806_v27 = vpop.permute.xlu2 %805 }
  0xae   : > { %416 = vrot.lane.b32.xlu0 %v408_v37, %s1237_s19  ;;  %v696_v37 = vrot.slane %v1523_v28, 2  ;;  %v810_v1 = vmul.f32 %v806_v27, %v1385_v13 }
  0xaf   : > { %v529_v43 = vrot.slane %v517_v33, 1  ;;  %v744_v57 = vrot.slane %v729_v38, 2  ;;  %v813_v33 = vmul.f32 %v806_v27, %v675_v35  ;;  %v674_v38 = vld [vmem:[%s1379_s18 + $0x8] sm:$0xfc] }
  0xb0   : > { %v702_v39 = vsel %vm648_vm1, %v696_v37, %v701_v40  ;;  %v821_v40 = vrot.slane %v810_v1, 2  ;;  %v684_v52 = vmul.f32 %v1515_v21, %v674_v38  ;;  %v809_v9 = vmul.f32 %v806_v27, %v674_v38 }
  0xb1   : > { %v531_v49 = vsel %vm441_vm0, %v529_v43, %v530_v51 }
  0xb2   : > { %v823_v23 = vrot.slane %v809_v9, 2  ;;  %v286_v9 = vld [vmem:[#allocation2 + $0x98] sm:$0xff] }
  0xb5   : > { %418 = vrot.lane.b32.xlu1 %v409_v46, %s1237_s19  ;;  %390 = vrot.lane.b32.xlu2 %v381_v44, %s1237_s19  ;;  %v532_v44 = vrot.slane %v518_v36, 1  ;;  %v1555_v46 = vmul.f32 %v1542_v41, %v1385_v13 }
  0xb6   : > { %502 = vrot.lane.b32.xlu0 %v495_v45, %s1236_s20  ;;  %v1550_v45 = vmul.f32 %v1542_v41, %v1382_v12 }
  0xb7   : > { %v534_v54 = vsel %vm441_vm0, %v532_v44, %v533_v53  ;;  %v737_v51 = vrot.slane %v1555_v46, 2 }
  0xb8   : > { %v740_v42 = vrot.slane %v1550_v45, 2  ;;  %v768_v45 = vmul.f32 %v765_v5, %v674_v38 }
  0xb9   : > { %v743_v53 = vsel %vm648_vm1, %v737_v51, %v742_v58 }
  0xba   : > { %v745_v47 = vsel %vm648_vm1, %v740_v42, %v744_v57 }
  0xbd   : > { %504 = vrot.lane.b32.xlu1 %v497_v3, %s1236_s20  ;;  %543 = vrot.lane.b32.xlu2 %v536_v59, %s1236_s20  ;;  %v699_v59 = vrot.slane %v1564_v50, 2  ;;  %v561_v3 = vmul.f32 %v1456_v56, %v1489_v10  ;;  %v786_v10 = vsel %vm648_vm1, %v780_v62, %v785_v6  ;;  %v1123_v50 = vld [vmem:[%s1873_s1] ss:$0 sm:$0xff] }
  0xbe   : > { %545 = vrot.lane.b32.xlu0 %v538_v0, %s1236_s20  ;;  %v601_v0 = vmul.f32 %v1454_v55, %v1498_v15 }
  0xbf   : > { %v704_v63 = vsel %vm648_vm1, %v699_v59, %v703_v61  ;;  %v698_v61 = vrot.slane %v684_v52, 2 }
  0xc0   : > { %v613_v7 = vrot.slane %v601_v0, 1 }
  0xc2   : > { %v615_v56 = vsel %vm441_vm0, %v613_v7, %v614_v4 }
  0xc5   : > { %627 = vrot.lane.b32.xlu1 %v620_v11, %s1237_s19  ;;  %586 = vrot.lane.b32.xlu2 %v579_v14, %s1237_s19  ;;  %v575_v11 = vrot.slane %v561_v3, 1  ;;  %v1595_v14 = vmul.f32 %v765_v5, %v1382_v12  ;;  %v310_v3 = vmul.f32 %v1123_v50, %v1385_v13 }
  0xc6   : > { %588 = vrot.lane.b32.xlu0 %v581_v16, %s1237_s19  ;;  %v772_v16 = vmul.f32 %v765_v5, %v675_v35 }
  0xc7   : > { %v577_v25 = vsel %vm441_vm0, %v575_v11, %v576_v8  ;;  %v783_v60 = vrot.slane %v1595_v14, 2  ;;  %v812_v8 = vmul.f32 %v806_v27, %v1518_v22 }
  0xc8   : > { %v787_v4 = vrot.slane %v772_v16, 2 }
  0xc9   : > { %v826_v43 = vrot.slane %v812_v8, 2 }
  0xca   : > { %v788_v55 = vsel %vm648_vm1, %v783_v60, %v787_v4 }
  0xcb   : > { %v827_v18 = vsel %vm648_vm1, %v821_v40, %v826_v43 }
  0xcd   : > { %500 = vrot.lane.b32.xlu1 %v493_v30, %s1236_s20  ;;  %629 = vrot.lane.b32.xlu2 %v622_v31, %s1237_s19  ;;  %v1618_v30 = vld [vmem:[%s1379_s18] sm:$0xfc]  ;;  %v1625_v31 = vmul.f32 %v806_v27, %v1382_v12  ;;  %s1020_s18 = sshll.u32 %s1295_s25, 5 }
  0xce   : > { %498 = vrot.lane.b32.xlu0 %v490_v34, %s1236_s20  ;;  %v618_v34 = vsel %vm441_vm0, %v616_v29, %v617_v24  ;;  %v683_v36 = vmul.f32 %v1515_v21, %v1618_v30  ;;  %v700_v21 = vsel %vm648_vm1, %v698_v61, %v699_v59  ;;  %s929_s28 = scalar_lea.hbm %s1878_s6, %s1020_s18 }
  0xcf   : > { %v824_v12 = vrot.slane %v1625_v31, 2  ;;  %s932_s9 = sshll.u32 %s929_s28, 4  ;;  %s933_s9 = int_to_ptr.hbm [resolvable:$true] %s932_s9 }
  0xd0   : > { %v695_v35 = vrot.slane %v683_v36, 2  ;;  %s1177_s11 = sshra.s32 %s933_s9, 4  ;;  %s1178_s11 = int_to_ptr.hbm [resolvable:$true] %s1177_s11 }
  0xd1   : > { %v825_v4 = vsel %vm648_vm1, %v823_v23, %v824_v12  ;;  %s1179_s25 = scalar_lea.hbm %s1178_s11, 32  ;;  %p1184_p3 = scmp.lt.s32.totalorder %s1178_s11, %s1878_s6 }
  0xd2   : > { %v697_v48 = vsel %vm648_vm1, %v695_v35, %v696_v37  ;;  %v808_v37 = vmul.f32 %v806_v27, %v1618_v30  ;;  %p1180_p0 = scmp.ne.s32.totalorder %s1178_s11, %s1179_s25  ;;  %p1185_p4 = scmp.lt.s32.totalorder %s1183_s15, %s1179_s25 }
  0xd4   : > { %v820_v46 = vrot.slane %v808_v37, 2  ;;  %v295_v37 = vld [vmem:[#allocation2 + $0xe0] sm:$0xff]  ;;  %p1181_p1 = pnand %p1180_p0, %p1312_p5  ;;  %p1186_p7 = por %p1185_p4, %p1184_p3 }
  0xd5   : > { %709 = vrot.lane.b32.xlu1 %v702_v39, %s1236_s20  ;;  %539 = vrot.lane.b32.xlu2 %v531_v49, %s1236_s20  ;;  %v828_v39 = vrot.slane %v813_v33, 2  ;;  %v725_v49 = vmul.f32 %v1542_v41, %v674_v38 }
  0xd6   : > { %541 = vrot.lane.b32.xlu0 %v534_v54, %s1236_s20  ;;  %v724_v54 = vmul.f32 %v1542_v41, %v1618_v30  ;;  %v822_v7 = vsel %vm648_vm1, %v820_v46, %v821_v40  ;;  %v309_v40 = vmul.f32 %v1123_v50, %v1404_v26  ;;  %v291_v50 = vld [vmem:[#allocation2 + $0xc0] sm:$0xff]  ;;  %v290_v46 = vld [vmem:[#allocation2 + $0xb8] sm:$0xff]  ;;  %p1182_p2 = pneg %p1181_p1 }
  0xd7   : > { %v829_v24 = vsel %vm648_vm1, %v824_v12, %v828_v39  ;;  %v739_v58 = vrot.slane %v725_v49, 2 }
  0xd8   : > { %p1187_p8 = pnand %p1186_p7, %p1182_p2 }
  0xd9   : > { %v741_v28 = vsel %vm648_vm1, %v739_v58, %v740_v42 }
  0xdd   : > { %752 = vrot.lane.b32.xlu1 %v745_v47, %s1236_s20  ;;  %711 = vrot.lane.b32.xlu2 %v704_v63, %s1236_s20  ;;  %v736_v47 = vrot.slane %v724_v54, 2 }
  0xde   : > { %750 = vrot.lane.b32.xlu0 %v743_v53, %s1236_s20  ;;  %v767_v53 = vmul.f32 %v765_v5, %v1618_v30 }
  0xdf   : > { %v738_v41 = vsel %vm648_vm1, %v736_v47, %v737_v51  ;;  %v782_v51 = vrot.slane %v768_v45, 2  ;;  %v293_v45 = vld [vmem:[#allocation2 + $0xd0] sm:$0xff] }
  0xe0   : > { %v779_v2 = vrot.slane %v767_v53, 2 }
  0xe1   : > { %v784_v11 = vsel %vm648_vm1, %v782_v51, %v783_v60  ;;  %v313_v60 = vmul.f32 %v1124_v19, %v1385_v13  ;;  %v288_v51 = vld [vmem:[#allocation2 + $0xa8] sm:$0xff] }
  0xe2   : > { %v781_v5 = vsel %vm648_vm1, %v779_v2, %v780_v62  ;;  %v287_v2 = vld [vmem:[#allocation2 + $0xa0] sm:$0xff] }
  0xe5   : > { %623 = vrot.lane.b32.xlu1 %v615_v56, %s1237_s19  ;;  %582 = vrot.lane.b32.xlu2 %v574_v20, %s1237_s19 }
  0xe6   : > { %584 = vrot.lane.b32.xlu0 %v577_v25, %s1237_s19 }
  0xed   : > { %795 = vrot.lane.b32.xlu1 %v788_v55, %s1237_s19  ;;  %625 = vrot.lane.b32.xlu2 %v618_v34, %s1237_s19 }
  0xee   : > { %793 = vrot.lane.b32.xlu0 %v786_v10, %s1237_s19 }
  0xef   : > { %v364_v44 = vpop.permute.xlu2 %363 }
  0xf5   : > { %705 = vrot.lane.b32.xlu1 %v697_v48, %s1236_s20  ;;  %834 = vrot.lane.b32.xlu2 %v827_v18, %s1237_s19  ;;  %v312_v18 = vmul.f32 %v1124_v19, %v1404_v26  ;;  %v296_v26 = vld [vmem:[#allocation2 + $0xe8] sm:$0xff]  ;;  %v279_v19 = vld [vmem:[#allocation2 + $0x60] sm:$0xff] }
  0xf6   : > { %836 = vrot.lane.b32.xlu0 %v829_v24, %s1237_s19 }
  0xf7   : > { %v395_v57 = vpop.permute.xlu2 %394 }
  0xfd   : > { %748 = vrot.lane.b32.xlu1 %v741_v28, %s1236_s20  ;;  %707 = vrot.lane.b32.xlu2 %v700_v21, %s1236_s20  ;;  %v297_v28 = vld [vmem:[#allocation2 + $0xf0] sm:$0xff]  ;;  %v298_v21 = vld [vmem:[#allocation2 + $0xf8] sm:$0xff] }
  0xfe   : > { %746 = vrot.lane.b32.xlu0 %v738_v41, %s1236_s20  ;;  %1021 = vmatpush.msra.mxu2 %v297_v28 }
  0xff   : > { %v338_v42 = vpop.permute.xlu1 %337  ;;  %v336_v59 = vpop.permute.xlu0 %335  ;;  %1037 = vmatpush.msra.mxu3 %v298_v21  ;;  %867 = vmatpush.msra.mxu0 %v297_v28  ;;  %v267_v28 = vld [vmem:[#allocation2] sm:$0xff] }
 0x100   : > { %v341_v63 = vsel %vm339_vm2, %v336_v59, %v338_v42  ;;  %v332_v0 = vpop.permute.xlu2 %331  ;;  %890 = vmatpush.msra.mxu1 %v298_v21  ;;  %1022 = vmatpush.msra.mxu2 %v295_v37  ;;  %v294_v42 = vld [vmem:[#allocation2 + $0xd8] sm:$0xff]  ;;  %v292_v59 = vld [vmem:[#allocation2 + $0xc8] sm:$0xff] }
 0x101   : > { %v345_v14 = vadd.f32 %v341_v63, %v310_v3  ;;  %1038 = vmatpush.msra.mxu3 %v296_v26  ;;  %868 = vmatpush.msra.mxu0 %v295_v37  ;;  %v289_v63 = vld [vmem:[#allocation2 + $0xb0] sm:$0xff]  ;;  %v268_v21 = vld [vmem:[#allocation2 + $0x8] sm:$0xff] }
 0x102   : > { %891 = vmatpush.msra.mxu1 %v296_v26  ;;  %1023 = vmatpush.msra.mxu2 %v293_v45 }
 0x103   : > { %1039 = vmatpush.msra.mxu3 %v294_v42  ;;  %869 = vmatpush.msra.mxu0 %v293_v45 }
 0x104   : > { %892 = vmatpush.msra.mxu1 %v294_v42  ;;  %1024 = vmatpush.msra.mxu2 %v291_v50 }
 0x105   : > { %830 = vrot.lane.b32.xlu1 %v822_v7, %s1237_s19  ;;  %789 = vrot.lane.b32.xlu2 %v781_v5, %s1237_s19  ;;  %v285_v5 = vld [vmem:[#allocation2 + $0x90] sm:$0xff] }
 0x106   : > { %791 = vrot.lane.b32.xlu0 %v784_v11, %s1237_s19  ;;  %1040 = vmatpush.msra.mxu3 %v292_v59  ;;  %v283_v11 = vld [vmem:[#allocation2 + $0x80] sm:$0xff] }
 0x107   : > { %v393_v16 = vpop.permute.xlu1 %392  ;;  %870 = vmatpush.msra.mxu0 %v291_v50  ;;  %893 = vmatpush.msra.mxu1 %v292_v59 }
 0x108   : > { %v398_v17 = vsel %vm396_vm3, %v393_v16, %v395_v57  ;;  %v366_v56 = vpop.permute.xlu0 %365  ;;  %v362_v20 = vpop.permute.xlu2 %361  ;;  %1025 = vmatpush.msra.mxu2 %v289_v63  ;;  %1041 = vmatpush.msra.mxu3 %v290_v46  ;;  %v281_v16 = vld [vmem:[#allocation2 + $0x70] sm:$0xff] }
 0x109   : > { %v1678_v25 = vadd.f32 %v398_v17, %v345_v14  ;;  %v368_v27 = vsel %vm339_vm2, %v364_v44, %v366_v56  ;;  %871 = vmatpush.msra.mxu0 %v289_v63  ;;  %894 = vmatpush.msra.mxu1 %v290_v46  ;;  %v284_v14 = vld [vmem:[#allocation2 + $0x88] sm:$0xff]  ;;  %v282_v17 = vld [vmem:[#allocation2 + $0x78] sm:$0xff]  ;;  %v1128_v46 = vld [vmem:[%s1874_s2 + $0x6] ss:$0 sm:$0xff] }
 0x10a   : > { %v372_v6 = vadd.f32 %v368_v27, %v313_v60  ;;  %1026 = vmatpush.msra.mxu2 %v287_v2  ;;  %1042 = vmatpush.msra.mxu3 %v288_v51  ;;  %v277_v60 = vld [vmem:[#allocation2 + $0x50] sm:$0xff] }
 0x10b   : > { %872 = vmatpush.msra.mxu0 %v287_v2  ;;  %895 = vmatpush.msra.mxu1 %v288_v51 }
 0x10c   : > { %1027 = vmatpush.msra.mxu2 %v285_v5  ;;  %1043 = vmatpush.msra.mxu3 %v286_v9 }
 0x10d   : > { %832 = vrot.lane.b32.xlu2 %v825_v4, %s1237_s19  ;;  %873 = vmatpush.msra.mxu0 %v285_v5  ;;  %v278_v4 = vld [vmem:[#allocation2 + $0x58] sm:$0xff] }
 0x10e   : > { %896 = vmatpush.msra.mxu1 %v286_v9  ;;  %1028 = vmatpush.msra.mxu2 %v283_v11 }
 0x10f   : > { %v423_v62 = vpop.permute.xlu1 %422  ;;  %1044 = vmatpush.msra.mxu3 %v284_v14  ;;  %874 = vmatpush.msra.mxu0 %v283_v11 }
 0x110   : > { %v421_v29 = vpop.permute.xlu0 %420  ;;  %v391_v55 = vpop.permute.xlu2 %390  ;;  %897 = vmatpush.msra.mxu1 %v284_v14  ;;  %1029 = vmatpush.msra.mxu2 %v281_v16 }
 0x111   : > { %v425_v1 = vsel %vm396_vm3, %v421_v29, %v423_v62  ;;  %1045 = vmatpush.msra.mxu3 %v282_v17  ;;  %875 = vmatpush.msra.mxu0 %v281_v16  ;;  %v1730_v62 = vld [vmem:[%s1873_s1 + $0x3] ss:$0 sm:$0xff]  ;;  %v276_v29 = vld [vmem:[#allocation2 + $0x48] sm:$0xff] }
 0x112   : > { %v1685_v8 = vadd.f32 %v425_v1, %v372_v6  ;;  %898 = vmatpush.msra.mxu1 %v282_v17  ;;  %1030 = vmatpush.msra.mxu2 %v279_v19  ;;  %v275_v6 = vld [vmem:[#allocation2 + $0x40] sm:$0xff]  ;;  %v274_v1 = vld [vmem:[#allocation2 + $0x38] sm:$0xff] }
 0x113   : > { %876 = vmatpush.msra.mxu0 %v279_v19 }
 0x114   : > { %1031 = vmatpush.msra.mxu2 %v277_v60 }
 0x115   : > { %877 = vmatpush.msra.mxu0 %v277_v60 }
 0x116   : > { %1032 = vmatpush.msra.mxu2 %v275_v6 }
 0x117   : > { %v360_v10 = vpop.permute.xlu1 %359  ;;  %878 = vmatpush.msra.mxu0 %v275_v6 }
 0x118   : > { %v334_v31 = vpop.permute.xlu0 %333  ;;  %v367_v33 = vsel %vm339_vm2, %v360_v10, %v362_v20  ;;  %v1688_v34 = vpop.permute.xlu2 %543  ;;  %v280_v20 = vld [vmem:[#allocation2 + $0x68] sm:$0xff]  ;;  %v271_v10 = vld [vmem:[#allocation2 + $0x20] sm:$0xff] }
 0x119   : > { %v340_v36 = vsel %vm339_vm2, %v332_v0, %v334_v31  ;;  %v371_v24 = vadd.f32 %v367_v33, %v312_v18  ;;  %1046 = vmatpush.msra.mxu3 %v280_v20  ;;  %899 = vmatpush.msra.mxu1 %v280_v20  ;;  %v1734_v31 = vmul.f32 %v1730_v62, %v1385_v13  ;;  %v270_v18 = vld [vmem:[#allocation2 + $0x18] sm:$0xff] }
 0x11a   : > { %v344_v43 = vadd.f32 %v340_v36, %v309_v40  ;;  %v437_v33 = vmul.f32 %v1730_v62, %v1415_v32  ;;  %v272_v36 = vld [vmem:[#allocation2 + $0x28] sm:$0xff]  ;;  %v1125_v40 = vld [vmem:[%s1874_s2 + $0x3] ss:$0 sm:$0xff] }
 0x11b   : > { %1047 = vmatpush.msra.mxu3 %v278_v4  ;;  %900 = vmatpush.msra.mxu1 %v278_v4  ;;  %v453_v37 = vmul.f32 %v1125_v40, %v1385_v13  ;;  %v454_v26 = vmul.f32 %v1125_v40, %v1415_v32 }
 0x11d   : > { %1048 = vmatpush.msra.mxu3 %v276_v29  ;;  %901 = vmatpush.msra.mxu1 %v276_v29  ;;  %v459_v59 = vrot.slane %v453_v37, 1  ;;  %v461_v63 = vrot.slane %v454_v26, 1 }
 0x11f   : > { %v389_v44 = vpop.permute.xlu1 %388  ;;  %1049 = vmatpush.msra.mxu3 %v274_v1  ;;  %902 = vmatpush.msra.mxu1 %v274_v1  ;;  %v462_v19 = vsel %vm441_vm0, %v459_v59, %v461_v63 }
 0x120   : > { %v417_v12 = vpop.permute.xlu0 %416  ;;  %v397_v39 = vsel %vm396_vm3, %v389_v44, %v391_v55  ;;  %v1693_v35 = vpop.permute.xlu2 %586  ;;  %v273_v55 = vld [vmem:[#allocation2 + $0x30] sm:$0xff] }
 0x121   : > { %v1695_v38 = vadd.f32 %v397_v39, %v344_v43  ;;  %1033 = vmatpush.msra.mxu2 %v273_v55  ;;  %879 = vmatpush.msra.mxu0 %v273_v55  ;;  %v269_v39 = vld [vmem:[#allocation2 + $0x10] sm:$0xff] }
 0x122   : > { %1050 = vmatpush.msra.mxu3 %v272_v36  ;;  %903 = vmatpush.msra.mxu1 %v272_v36 }
 0x123   : > { %1034 = vmatpush.msra.mxu2 %v271_v10  ;;  %880 = vmatpush.msra.mxu0 %v271_v10  ;;  %v452_v10 = vmul.f32 %v1125_v40, %v1498_v15 }
 0x124   : > { %1051 = vmatpush.msra.mxu3 %v270_v18  ;;  %904 = vmatpush.msra.mxu1 %v270_v18 }
 0x125   : > { %1035 = vmatpush.msra.mxu2 %v269_v39  ;;  %881 = vmatpush.msra.mxu0 %v269_v39  ;;  %v458_v39 = vrot.slane %v452_v10, 1 }
 0x126   : > { %1052 = vmatpush.msra.mxu3 %v268_v21  ;;  %905 = vmatpush.msra.mxu1 %v268_v21 }
 0x127   : > { %v419_v48 = vpop.permute.xlu1 %418  ;;  %1036 = vmatpush.msra.mxu2 %v267_v28  ;;  %882 = vmatpush.msra.mxu0 %v267_v28 }
 0x128   : > { %v1698_v49 = vpop.permute.xlu0 %502  ;;  %v424_v52 = vsel %vm396_vm3, %v417_v12, %v419_v48  ;;  %v1701_v54 = vpop.permute.xlu2 %629  ;;  %v445_v48 = vrot.slane %v437_v33, 1  ;;  %v435_v33 = vmul.f32 %v1730_v62, %v1498_v15  ;;  %v1130_v15 = vld [vmem:[%s1875_s3 + $0x2] ss:$0 sm:$0xff]  ;;  %v1131_v62 = vld [vmem:[%s1875_s3 + $0x1] ss:$0 sm:$0xff] }
 0x129   : > { %v1703_v57 = vadd.f32 %v424_v52, %v371_v24  ;;  %v443_v24 = vrot.slane %v1734_v31, 1  ;;  %v1749_v52 = vld [vmem:[%s1873_s1 + $0x6] ss:$0 sm:$0xff] }
 0x12a   : > { %v1758_v42 = vmul.f32 %v1749_v52, %v1385_v13  ;;  %v644_v50 = vmul.f32 %v1749_v52, %v1518_v22 }
 0x12b   : > { %v446_v45 = vsel %vm441_vm0, %v443_v24, %v445_v48  ;;  %v442_v48 = vrot.slane %v435_v33, 1 }
 0x12c   : > { %v450_v51 = vadd.f32 %v446_v45, %v1678_v25  ;;  %v650_v11 = vrot.slane %v1758_v42, 2  ;;  %v652_v14 = vrot.slane %v644_v50, 2  ;;  %v460_v45 = vsel %vm441_vm0, %v458_v39, %v459_v59  ;;  %v1132_v50 = vld [vmem:[%s1875_s3 + $0x3] ss:$0 sm:$0xff] }
 0x12d   : > { %v444_v63 = vsel %vm441_vm0, %v442_v48, %v443_v24 }
 0x12e   : > { %v449_v31 = vadd.f32 %v444_v63, %v1695_v38 }
 0x12f   : > { %v1705_v58 = vpop.permute.xlu1 %504 }
 0x130   : > { %v1707_v61 = vpop.permute.xlu0 %545  ;;  %v1709_v47 = vpop.permute.xlu2 %539  ;;  %v507_v32 = vsel %vm339_vm2, %v1698_v49, %v1705_v58  ;;  %v660_v49 = vmul.f32 %v1128_v46, %v1385_v13  ;;  %v661_v58 = vmul.f32 %v1128_v46, %v1518_v22 }
 0x131   : > { %v511_v17 = vadd.f32 %v507_v32, %v450_v51  ;;  %v548_v25 = vsel %vm339_vm2, %v1688_v34, %v1707_v61  ;;  %v642_v32 = vmul.f32 %v1749_v52, %v1618_v30 }
 0x132   : > { %v666_v22 = vrot.slane %v660_v49, 2  ;;  %v668_v4 = vrot.slane %v661_v58, 2 }
 0x137   : > { %v1711_v53 = vpop.permute.xlu1 %627 }
 0x138   : > { %v1713_v41 = vpop.permute.xlu0 %588  ;;  %v1715_v0 = vpop.permute.xlu2 %711  ;;  %v632_v60 = vsel %vm396_vm3, %v1711_v53, %v1701_v54  ;;  %v669_v54 = vsel %vm648_vm1, %v666_v22, %v668_v4 }
 0x139   : > { %v591_v9 = vsel %vm396_vm3, %v1693_v35, %v1713_v41  ;;  %v653_v35 = vsel %vm648_vm1, %v650_v11, %v652_v14  ;;  %v466_v41 = vadd.f32 %v462_v19, %v1685_v8  ;;  %v465_v14 = vadd.f32 %v460_v45, %v1703_v57 }
 0x13a   : > { %v595_v20 = vadd.f32 %v591_v9, %v511_v17 }
 0x13b   : > { %v552_v29 = vadd.f32 %v548_v25, %v466_v41 }
 0x13c   : > { %v657_v55 = vadd.f32 %v653_v35, %v595_v20 }
 0x13d   : > { %v636_v1 = vadd.f32 %v632_v60, %v552_v29 }
 0x13f   : > { %v1717_v3 = vpop.permute.xlu1 %500  ;;  %v673_v18 = vadd.f32 %v669_v54, %v636_v1  ;;  %v299_v54 = vld [vmem:[%s1877_s5] sm:$0x3] }
 0x140   : > { %v1719_v7 = vpop.permute.xlu0 %498  ;;  %v1721_v56 = vpop.permute.xlu2 %582 }
 0x147   : > { %v1723_v23 = vpop.permute.xlu1 %709 }
 0x148   : > { %v1725_v27 = vpop.permute.xlu0 %541  ;;  %v1741_v43 = vpop.permute.xlu2 %625  ;;  %v714_v13 = vsel %vm339_vm2, %v1723_v23, %v1715_v0  ;;  %v1129_v0 = vld [vmem:[%s1875_s3] ss:$0 sm:$0xff] }
 0x149   : > { %v718_v8 = vadd.f32 %v714_v13, %v657_v55  ;;  %v547_v51 = vsel %vm339_vm2, %v1709_v47, %v1725_v27  ;;  %v649_v27 = vrot.slane %v642_v32, 2 }
 0x14a   : > { %v551_v52 = vadd.f32 %v547_v51, %v465_v14 }
 0x14f   : > { %v1743_v44 = vpop.permute.xlu1 %752 }
 0x150   : > { %v751_v12 = vpop.permute.xlu0 %750  ;;  %v835_v16 = vpop.permute.xlu2 %834 }
 0x151   : > { %v755_v23 = vsel %vm339_vm2, %v751_v12, %v1743_v44  ;;  %v659_v12 = vmul.f32 %v1128_v46, %v1618_v30  ;;  %v506_v46 = vsel %vm339_vm2, %v1719_v7, %v1717_v3 }
 0x152   : > { %v759_v40 = vadd.f32 %v755_v23, %v673_v18  ;;  %v510_v49 = vadd.f32 %v506_v46, %v449_v31 }
 0x153   : > { %v665_v17 = vrot.slane %v659_v12, 2 }
 0x155   : > { %v667_v25 = vsel %vm648_vm1, %v665_v17, %v666_v22 }
 0x157   : > { %v624_v2 = vpop.permute.xlu1 %623 }
 0x158   : > { %v585_v5 = vpop.permute.xlu0 %584  ;;  %v708_v53 = vpop.permute.xlu2 %707  ;;  %v631_v24 = vsel %vm396_vm3, %v624_v2, %v1741_v43  ;;  %v651_v43 = vsel %vm648_vm1, %v649_v27, %v650_v11 }
 0x159   : > { %v590_v47 = vsel %vm396_vm3, %v1721_v56, %v585_v5  ;;  %v635_v7 = vadd.f32 %v631_v24, %v551_v52 }
 0x15a   : > { %v594_v57 = vadd.f32 %v590_v47, %v510_v49 }
 0x15b   : > { %v672_v5 = vadd.f32 %v667_v25, %v635_v7 }
 0x15c   : > { %v656_v35 = vadd.f32 %v651_v43, %v594_v57 }
 0x15f   : > { %v796_v6 = vpop.permute.xlu1 %795 }
 0x160   : > { %v794_v34 = vpop.permute.xlu0 %793 }
 0x161   : > { %v798_v61 = vsel %vm396_vm3, %v794_v34, %v796_v6 }
 0x162   : > { %v802_v36 = vadd.f32 %v798_v61, %v718_v8 }
 0x164   : > { %v846_v21 = vmul.f32 %v1129_v0, %v802_v36  ;;  %v864_v36 = vperm.slane %v299_v54, 1 }
 0x166   : > { %v849_v59 = vadd.f32 %v1131_v62, %v846_v21 }
 0x167   : > { %v706_v28 = vpop.permute.xlu1 %705 }
 0x168   : > { %v837_v37 = vpop.permute.xlu0 %836  ;;  %v851_v20 = vmax.f32 %v849_v59, 0.0  ;;  %v713_v56 = vsel %vm339_vm2, %v706_v28, %v708_v53  ;;  %v863_v53 = vperm.slane %v299_v54, 0 }
 0x169   : > { %v839_v26 = vsel %vm396_vm3, %v835_v16, %v837_v37  ;;  %v790_v16 = vpop.permute.xlu2 %789  ;;  %v717_v4 = vadd.f32 %v713_v56, %v656_v35 }
 0x16a   : > { %v843_v44 = vadd.f32 %v839_v26, %v759_v40 }
 0x16c   : > { %v854_v9 = vmul.f32 %v1130_v15, %v843_v44 }
 0x16e   : > { %v857_v30 = vadd.f32 %v1132_v50, %v854_v9 }
 0x16f   : > { %v749_v19 = vpop.permute.xlu1 %748 }
 0x170   : > { %v747_v58 = vpop.permute.xlu0 %746  ;;  %v859_v3 = vmax.f32 %v857_v30, 0.0 }
 0x171   : > { %v754_v2 = vsel %vm339_vm2, %v747_v58, %v749_v19  ;;  %v833_v41 = vpop.permute.xlu2 %832 }
 0x172   : > { %v861_v38 = vadd.f32 %v859_v3, %v851_v20  ;;  %v758_v60 = vadd.f32 %v754_v2, %v672_v5 }
 0x174   : > { %886 = vmatmul.f32.vlgmr.msra.gmra.mxu2 %v861_v38  ;;  %909 = vmatmul.f32.vlgmr.msra.gmra.mxu3 %v861_v38 }
 0x177   : > { %v831_v13 = vpop.permute.xlu1 %830 }
 0x178   : > { %v792_v6 = vpop.permute.xlu0 %791  ;;  %v838_v22 = vsel %vm396_vm3, %v831_v13, %v833_v41 }
 0x179   : > { %v797_v42 = vsel %vm396_vm3, %v790_v16, %v792_v6  ;;  %v842_v29 = vadd.f32 %v838_v22, %v758_v60 }
 0x17a   : > { %v801_v11 = vadd.f32 %v797_v42, %v717_v4 }
 0x17b   : > { %v853_v55 = vmul.f32 %v1130_v15, %v842_v29 }
 0x17c   : > { %v845_v34 = vmul.f32 %v1129_v0, %v801_v11 }
 0x17d   : > { %v856_v61 = vadd.f32 %v1132_v50, %v853_v55 }
 0x17e   : > { %v848_v1 = vadd.f32 %v1131_v62, %v845_v34 }
 0x17f   : > { %v858_v10 = vmax.f32 %v856_v61, 0.0 }
 0x180   : > { %v850_v8 = vmax.f32 %v848_v1, 0.0 }
 0x182   : > { %v860_v33 = vadd.f32 %v858_v10, %v850_v8 }
 0x184   : > { %883 = vmatmul.f32.vlgmr.msra.gmra.mxu0 %v860_v33  ;;  %906 = vmatmul.f32.vlgmr.msra.gmra.mxu1 %v860_v33 }
 0x1f7   : > { %v887_v23 = vpop.f32.mrf.mxu2  ;;  %v910_v39 = vpop.f32.mrf.mxu3 }
 0x1f8   : > { %v888_v18 = vadd.f32 %v887_v23, %v863_v53  ;;  %v911_v0 = vadd.f32 %v910_v39, %v864_v36 }
 0x1fa   : > { %915 = vst [vmem:[%s261_s17 + $0x10] sm:$0xff] %v888_v18 }
 0x1fb   : > { %916 = vst [vmem:[%s261_s17 + $0x18] sm:$0xff] %v911_v0 }
 0x201   : > { %v884_v48 = vpop.f32.mrf.mxu0  ;;  %v907_v28 = vpop.f32.mrf.mxu1 }
 0x202   : > { %v885_v40 = vadd.f32 %v884_v48, %v863_v53  ;;  %v908_v21 = vadd.f32 %v907_v28, %v864_v36 }
 0x204   : > { %913 = vst [vmem:[%s261_s17] sm:$0xff] %v885_v40 }
 0x205   : > { %914 = vst [vmem:[%s261_s17 + $0x8] sm:$0xff] %v908_v21 }
 0x206   : > { %1190 = shalt.err (!%p1187_p8)
}
 0x207   : > { %s1238_s13 = smov 256  }
 0x208   : > { %1058 = dma.vmem_to_hbm [thread:$0]  (%p1312_p5), %s931_s29, 512, %s933_s9, %s918_s10, %s1238_s13, %s1238_s13, %s1235_s26  }
 0x209 PF: > { %p1070_p9 = scmp.ge.s32.totalorder %s1229_s24, 2  ;;  %s947_s17 = sand.u32 1, %s1217_s21  }
 0x20a   : > { %s948_s20 = scalar_lea.sflag [#allocation4], %s947_s17 }
 0x20b   : > { %p1065_p10 = pnand %p1070_p9, %p1316_p6 }
 0x20d   : > { %p1066_p11 = pneg %p1065_p10 }
 0x20f   : > { %1212 = dma.done.wait (%p1066_p11), %s948_s20, 512  }
 0x210   : > { %1214 = vsyncadd (%p1066_p11), %s948_s20, 4294966784  ;;  %p17_p12 = scmp.ge.s32.totalorder %s1299_s27, 4   ;;  %s1881_s21 = smov %s1221_s22 }
 0x211   : > { %s1882_s22 = smov %s1225_s23  ;;  %s1883_s23 = smov %s1310_s30 }
 0x212   : > { %s1884_s24 = smov %s1299_s27  ;;  %19 = sbr.rel (!%p17_p12) target bundleno = 4 (0x4), region = 84 }
 0x217   :  { %954 = vsyncpa [#allocation3], 1 }
 0x218   :  { %956 = vsyncpa [#allocation3 + $0x1], 1 }
 0x219   :  { %957 = vsyncpa [#allocation4], 1 }
 0x21a   :  { %959 = vsyncpa [#allocation4 + $0x1], 1 }

</bundles_post_ra>
